<compile_context>
chip_gen: v7x
topology: tpu7x:2x2x1
jax: 0.10.0
libtpu: 0.0.40
codegen_flags: <defaults>
</compile_context>

<pallas_src>
import math
import functools

import jax
import jax.numpy as jnp
from jax.experimental import pallas as pl
from jax.experimental.pallas import tpu as pltpu


_MAX_TB = 2048  # max batch-tile rows per grid step


# ----------------------------------------------------------------------------
# Best-effort device heuristics (safe fallbacks if detection fails)
# ----------------------------------------------------------------------------
def _device_kind():
    try:
        return jax.devices()[0].device_kind.lower()
    except Exception:
        return ""


def _num_tensorcores():
    """Chips whose single jax device spans 2 TensorCores (megacore / v7x)."""
    kind = _device_kind()
    return 2 if any(t in kind for t in ("v7", "tpu7", "v5p", "v4")) else 1


def _mxu_width():
    """MXU tile width: 128 on v5e, 256 on v6e/v7x (default 256)."""
    kind = _device_kind()
    return 128 if any(t in kind for t in ("v5e", "v5 lite", "v5lite")) else 256


def _round_up(x, m):
    return ((x + m - 1) // m) * m


def _choose_batch_tile(B):
    """Pick the batch tile TB and 1-D grid.

    * 1-TC chips: one grid step up to _MAX_TB rows (per-step overhead ~0.35us
      dominates these tiny layers, so fewer steps is strictly better).
    * multi-TC chips: >=2 'parallel' steps so both TensorCores get work.
    * multi-step tiles are multiples of 128 so the [2, TB] output blocks are
      lane-dense and the [TB, d] input blocks are sublane-aligned.
    """
    if _num_tensorcores() >= 2 and B >= 256:
        tb = min(_MAX_TB, _round_up(pl.cdiv(B, 2), 128))
    elif B <= _MAX_TB:
        tb = B
    else:
        tb = _MAX_TB
    return tb, (pl.cdiv(B, tb),)


# ----------------------------------------------------------------------------
# Kernel
# ----------------------------------------------------------------------------
def _metaq_fused_kernel(*refs, n_x):
    """Fused twin-Q MLP with a lane-dense [2, TB] output.

    refs = (x_0..x_{n_x-1}, w1_0..w1_{n_x-1}, w2, w3, b, b_out, out)
      x_i   : [TB, d_i]      activation pieces (state, action[, alpha])
      w1_i  : [d_i, 2H]      row-split of the fused layer-1 weight
      w2    : [2H, 2H] block-diag(w2,w5)   OR   [2, H, H] stacked heads
      w3    : [2, 2H] (row0=[w3^T|0], row1=[0|w6^T])   OR   [2, H] stacked
      b     : [2, 2H] f32    row0 = [b1|b4], row1 = [b2|b5]
      b_out : [2, 1]  f32    (b3, b6)
      out   : [2, TB] f32    row 0 = q1, row 1 = q2  (lane-dense stores)
    """
    x_refs = refs[:n_x]
    w1_refs = refs[n_x:2 * n_x]
    w2_ref, w3_ref, b_ref, bq_ref, out_ref = refs[2 * n_x:]
    cdt = w2_ref.dtype                      # matmul compute dtype (f32 or bf16)
    nt_dims = (((1,), (1,)), ((), ()))      # contract both last dims (A @ B^T)

    # ---- layer 1: concat([state, action(, alpha)]) @ W1 via accumulating dots
    acc = None
    for x_r, w_r in zip(x_refs, w1_refs):
        if w_r.shape[0] == 1:
            # K=1 column (alpha): VPU broadcast-FMA on the idle VALU slot;
            # skips a full MXU weight-load/push/pop pass.
            part = x_r[...].astype(jnp.float32) * w_r[...].astype(jnp.float32)
        else:
            part = jnp.dot(x_r[...].astype(cdt), w_r[...],
                           preferred_element_type=jnp.float32)
        acc = part if acc is None else acc + part
    h = jnp.maximum(acc + b_ref[0:1, :], 0.0)        # bias/ReLU stay f32 (VPU)

    if w2_ref.ndim == 3:
        # ---- split heads: two dense HxH dots (no zero block-diag padding)
        H = w2_ref.shape[1]
        for head in range(2):
            hh = h[:, head * H:(head + 1) * H]
            g = jnp.maximum(
                jnp.dot(hh.astype(cdt), w2_ref[head],
                        preferred_element_type=jnp.float32)
                + b_ref[1:2, head * H:(head + 1) * H], 0.0)
            # [1,H] x [TB,H]^T -> [1,TB]: result is already lane-dense.
            q = jax.lax.dot_general(w3_ref[head:head + 1, :], g.astype(cdt),
                                    nt_dims, preferred_element_type=jnp.float32)
            out_ref[head:head + 1, :] = (
                q + bq_ref[head:head + 1, :]).astype(out_ref.dtype)
    else:
        # ---- fused block-diagonal heads: one [2H,2H] dot + one NT dot
        h2 = jnp.maximum(
            jnp.dot(h.astype(cdt), w2_ref[...],
                    preferred_element_type=jnp.float32) + b_ref[1:2, :], 0.0)
        q = jax.lax.dot_general(w3_ref[...], h2.astype(cdt), nt_dims,
                                preferred_element_type=jnp.float32)   # [2, TB]
        out_ref[...] = (q + bq_ref[...]).astype(out_ref.dtype)


# ----------------------------------------------------------------------------
# Wrapper
# ----------------------------------------------------------------------------
@functools.partial(jax.jit, static_argnames=("alpha_embedding",))
def meta_q_forward(state, action, alpha, packed, alpha_embedding=False):
    """Forward pass of MetaQNetwork. Returns (q1, q2), each [B, 1] f32."""
    xs = (state, action, alpha) if alpha_embedding else (state, action)

    w1_parts = packed["w1_parts"]
    assert len(w1_parts) == len(xs), "packed params do not match alpha_embedding"
    w2, w3 = packed["w2"], packed["w3"]
    bias, b_out = packed["b"], packed["b_out"]

    B = state.shape[0]
    n_x = len(xs)
    H2 = bias.shape[1]                      # 2 * hidden_dim

    TB, grid = _choose_batch_tile(B)

    x_specs = [pl.BlockSpec((TB, x.shape[1]), lambda i: (i, 0)) for x in xs]

    def const_spec(a):                      # weights: VMEM-resident, constant index
        return pl.BlockSpec(tuple(a.shape), lambda i, _n=a.ndim: (0,) * _n)

    w_specs = ([const_spec(w) for w in w1_parts]
               + [const_spec(w2), const_spec(w3),
                  const_spec(bias), const_spec(b_out)])
    # Lane-dense output slab [2, B]: row 0 = q1, row 1 = q2.
    out_spec = pl.BlockSpec((2, TB), lambda i: (0, i))

    args = (*xs, *w1_parts, w2, w3, bias, b_out)
    d_in = sum(w.shape[0] for w in w1_parts)
    if w2.ndim == 3:
        H = w2.shape[1]
        l23 = 2 * H * H + 2 * H
    else:
        l23 = H2 * H2 + 2 * H2
    flops = 2 * B * (d_in * H2 + l23)
    bytes_accessed = int(sum(a.size * a.dtype.itemsize for a in args) + B * 2 * 4)

    q12 = pl.pallas_call(
        functools.partial(_metaq_fused_kernel, n_x=n_x),
        out_shape=jax.ShapeDtypeStruct((2, B), jnp.float32),
        grid=grid,
        in_specs=x_specs + w_specs,
        out_specs=out_spec,
        compiler_params=pltpu.CompilerParams(
            dimension_semantics=("parallel",),
            vmem_limit_bytes=32 * 1024 * 1024),
        cost_estimate=pl.CostEstimate(flops=flops, transcendentals=0,
                                      bytes_accessed=bytes_accessed),
    )(*args)

    return q12[0].reshape(B, 1), q12[1].reshape(B, 1)


# ----------------------------------------------------------------------------
# Parameter init (torch-like, unfused) and packing into fused kernel slabs
# ----------------------------------------------------------------------------
def xavier_uniform(key, fan_in, fan_out, gain=1.0):
    # Matches torch.nn.init.xavier_uniform_ (symmetric bound, so storing the
    # weight as [in, out] instead of [out, in] is distributionally identical).
    bound = gain * math.sqrt(6.0 / (fan_in + fan_out))
    return jax.random.uniform(key, (fan_in, fan_out), jnp.float32,
                              minval=-bound, maxval=bound)


def init_params(key, num_inputs, num_actions, hidden_dim, alpha_embedding=False):
    # NOTE: the torch module's alpha_embedding=True path only type-checks if
    # linear1/linear4 already account for the extra alpha column; here we size
    # fan_in explicitly so both paths are well-formed.
    d = num_inputs + num_actions + (1 if alpha_embedding else 0)
    keys = jax.random.split(key, 6)
    return {
        "w1": xavier_uniform(keys[0], d, hidden_dim),
        "b1": jnp.zeros((1, hidden_dim), jnp.float32),
        "w2": xavier_uniform(keys[1], hidden_dim, hidden_dim),
        "b2": jnp.zeros((1, hidden_dim), jnp.float32),
        "w3": xavier_uniform(keys[2], hidden_dim, 1),
        "b3": jnp.zeros((1, 1), jnp.float32),
        "w4": xavier_uniform(keys[3], d, hidden_dim),
        "b4": jnp.zeros((1, hidden_dim), jnp.float32),
        "w5": xavier_uniform(keys[4], hidden_dim, hidden_dim),
        "b5": jnp.zeros((1, hidden_dim), jnp.float32),
        "w6": xavier_uniform(keys[5], hidden_dim, 1),
        "b6": jnp.zeros((1, 1), jnp.float32),
    }


def pack_params(params, num_inputs, num_actions, *, alpha_embedding=False,
                compute_dtype=jnp.bfloat16, split_heads=None):
    """Fuse the twin heads into the slabs used by the kernel.

    split_heads=None (auto): use dense per-head weights ([2,H,H] / [2,H])
    whenever the 2H block-diagonal would span more than one MXU tile (where it
    costs 2x zero weight bytes and 2x dead MXU passes); otherwise keep the
    single block-diagonal [2H,2H] dot.
    """
    H = params["w1"].shape[1]
    d = num_inputs + num_actions + (1 if alpha_embedding else 0)
    assert params["w1"].shape[0] == d, "params fan_in does not match alpha_embedding"

    if split_heads is None:
        split_heads = (2 * H) > _mxu_width()

    # Layer 1: [D, 2H], split row-wise per activation tensor (no wrapper concat).
    w1f = jnp.concatenate([params["w1"], params["w4"]], axis=1)          # [D, 2H]
    bounds = ((0, num_inputs, num_inputs + num_actions, d) if alpha_embedding
              else (0, num_inputs, d))
    w1_parts = tuple(w1f[lo:hi].astype(compute_dtype)
                     for lo, hi in zip(bounds[:-1], bounds[1:]))

    if split_heads:
        # Dense per-head layers 2/3 (no zero padding).
        w2f = jnp.stack([params["w2"], params["w5"]], axis=0)            # [2,H,H]
        w3f = jnp.stack([params["w3"][:, 0], params["w6"][:, 0]], axis=0)  # [2,H]
    else:
        # Layer 2: block-diagonal [2H, 2H].
        w2f = jnp.zeros((2 * H, 2 * H), jnp.float32)
        w2f = w2f.at[:H, :H].set(params["w2"]).at[H:, H:].set(params["w5"])
        # Layer 3: pre-transposed [2, 2H] so the final NT dot directly emits the
        # lane-dense [2, TB] output (row 0 -> q1, row 1 -> q2).
        w3f = jnp.zeros((2, 2 * H), jnp.float32)
        w3f = w3f.at[0, :H].set(params["w3"][:, 0]).at[1, H:].set(params["w6"][:, 0])

    # Biases stay f32 (elementwise path is f32, v5e-safe).
    bias = jnp.concatenate([
        jnp.concatenate([params["b1"], params["b4"]], axis=1),
        jnp.concatenate([params["b2"], params["b5"]], axis=1)], axis=0)   # [2, 2H]
    b_out = jnp.concatenate([params["b3"], params["b6"]], axis=0)         # [2, 1]

    return {
        "w1_parts": w1_parts,
        "w2": w2f.astype(compute_dtype),
        "w3": w3f.astype(compute_dtype),
        "b": bias.astype(jnp.float32),
        "b_out": b_out.astype(jnp.float32),
    }


# ----------------------------------------------------------------------------
# Pure-JAX reference (unfused, mirrors the torch forward)
# ----------------------------------------------------------------------------
def _reference_forward(state, action, alpha, params, alpha_embedding=False):
    if alpha_embedding:
        xu = jnp.concatenate([state, action, alpha], axis=1)
    else:
        xu = jnp.concatenate([state, action], axis=1)
    h = jax.nn.relu(xu @ params["w1"] + params["b1"])
    h = jax.nn.relu(h @ params["w2"] + params["b2"])
    q1 = h @ params["w3"] + params["b3"]
    g = jax.nn.relu(xu @ params["w4"] + params["b4"])
    g = jax.nn.relu(g @ params["w5"] + params["b5"])
    q2 = g @ params["w6"] + params["b6"]
    return q1, q2


def _max_rel_err(x, r):
    return float(jnp.max(jnp.abs(x - r)) / (jnp.max(jnp.abs(r)) + 1e-6))


# ----------------------------------------------------------------------------
if __name__ == "__main__":
    # Make the XLA reference matmuls high-precision so comparisons are tight.
    try:
        jax.config.update("jax_default_matmul_precision", "highest")
    except Exception:
        pass

    key = jax.random.PRNGKey(0)
    k_p, k_s, k_a, k_al, k_p2, k_big = jax.random.split(key, 6)

    # --- test 1: small batch, f32 compute, fused block-diag heads -----------
    n_in, n_act, H, B = 10, 4, 32, 8
    params = init_params(k_p, n_in, n_act, H, alpha_embedding=False)
    packed_f32 = pack_params(params, n_in, n_act, alpha_embedding=False,
                             compute_dtype=jnp.float32, split_heads=False)
    state = jax.random.normal(k_s, (B, n_in), jnp.float32)
    action = jax.random.normal(k_a, (B, n_act), jnp.float32)
    alpha = jax.random.normal(k_al, (B, 1), jnp.float32)

    q1, q2 = meta_q_forward(state, action, alpha, packed_f32,
                            alpha_embedding=False)
    jax.block_until_ready((q1, q2))
    r1, r2 = _reference_forward(state, action, alpha, params,
                                alpha_embedding=False)
    assert q1.shape == (B, 1) and q2.shape == (B, 1)
    assert _max_rel_err(q1, r1) < 2e-3, "q1 mismatch (f32 block-diag path)"
    assert _max_rel_err(q2, r2) < 2e-3, "q2 mismatch (f32 block-diag path)"

    # --- test 2: bf16 matmul compute (MXU-native), f32 accumulation ---------
    packed_bf16 = pack_params(params, n_in, n_act, alpha_embedding=False,
                              compute_dtype=jnp.bfloat16, split_heads=False)
    q1b, q2b = meta_q_forward(state, action, alpha, packed_bf16,
                              alpha_embedding=False)
    jax.block_until_ready((q1b, q2b))
    assert _max_rel_err(q1b, r1) < 5e-2, "q1 mismatch (bf16 path)"
    assert _max_rel_err(q2b, r2) < 5e-2, "q2 mismatch (bf16 path)"

    # --- test 3: alpha_embedding=True -> K=1 alpha column uses the VPU FMA --
    params_a = init_params(k_p2, n_in, n_act, H, alpha_embedding=True)
    packed_a = pack_params(params_a, n_in, n_act, alpha_embedding=True,
                           compute_dtype=jnp.float32, split_heads=False)
    q1a, q2a = meta_q_forward(state, action, alpha, packed_a,
                              alpha_embedding=True)
    jax.block_until_ready((q1a, q2a))
    r1a, r2a = _reference_forward(state, action, alpha, params_a,
                                  alpha_embedding=True)
    assert _max_rel_err(q1a, r1a) < 2e-3, "q1 mismatch (alpha FMA path)"
    assert _max_rel_err(q2a, r2a) < 2e-3, "q2 mismatch (alpha FMA path)"

    # --- test 4: large batch -> multi-step grid, partial last tile, split heads
    n_in2, n_act2, H2b, B2 = 24, 8, 128, 2304
    kp, ks, ka, kal = jax.random.split(k_big, 4)
    params_big = init_params(kp, n_in2, n_act2, H2b)
    packed_split = pack_params(params_big, n_in2, n_act2,
                               compute_dtype=jnp.float32, split_heads=True)
    state2 = jax.random.normal(ks, (B2, n_in2), jnp.float32)
    action2 = jax.random.normal(ka, (B2, n_act2), jnp.float32)
    alpha2 = jax.random.normal(kal, (B2, 1), jnp.float32)
    q1L, q2L = meta_q_forward(state2, action2, alpha2, packed_split,
                              alpha_embedding=False)
    jax.block_until_ready((q1L, q2L))
    r1L, r2L = _reference_forward(state2, action2, alpha2, params_big,
                                  alpha_embedding=False)
    assert q1L.shape == (B2, 1) and q2L.shape == (B2, 1)
    assert _max_rel_err(q1L, r1L) < 2e-3, "q1 mismatch (split-heads grid path)"
    assert _max_rel_err(q2L, r2L) < 2e-3, "q2 mismatch (split-heads grid path)"

    # --- test 5: default packing (bf16 weights, auto head layout) smoke test
    packed_def = pack_params(params_big, n_in2, n_act2)
    q1d, q2d = meta_q_forward(state2, action2, alpha2, packed_def,
                              alpha_embedding=False)
    jax.block_until_ready((q1d, q2d))
    assert _max_rel_err(q1d, r1L) < 1e-1, "q1 mismatch (default bf16 path)"
    assert _max_rel_err(q2d, r2L) < 1e-1, "q2 mismatch (default bf16 path)"

    print("KERNEL_OK")
</pallas_src>

<mosaic_0001>
module attributes {stable_mosaic.version = 11 : i64} {
  func.func @_metaq_fused_kernel(%arg0: i32, %arg1: memref<8x10xf32, #tpu.memory_space<vmem>>, %arg2: memref<8x4xf32, #tpu.memory_space<vmem>>, %arg3: memref<10x64xf32, #tpu.memory_space<vmem>>, %arg4: memref<4x64xf32, #tpu.memory_space<vmem>>, %arg5: memref<64x64xf32, #tpu.memory_space<vmem>>, %arg6: memref<2x64xf32, #tpu.memory_space<vmem>>, %arg7: memref<2x64xf32, #tpu.memory_space<vmem>>, %arg8: memref<2x1xf32, #tpu.memory_space<vmem>>, %arg9: memref<2x8xf32, #tpu.memory_space<vmem>>) attributes {dimension_semantics = [#tpu.dimension_semantics<parallel>], iteration_bounds = array<i64: 1>, scalar_prefetch = 0 : i64, scratch_operands = 0 : i64, tpu.core_type = #tpu.core_type<tc>, window_params = [{transform_indices = @transform_0, window_bounds = array<i64: 8, 10>}, {transform_indices = @transform_1, window_bounds = array<i64: 8, 4>}, {pipeline_mode = #tpu.pipeline_mode<synchronous>, transform_indices = @transform_2, window_bounds = array<i64: 10, 64>}, {pipeline_mode = #tpu.pipeline_mode<synchronous>, transform_indices = @transform_3, window_bounds = array<i64: 4, 64>}, {pipeline_mode = #tpu.pipeline_mode<synchronous>, transform_indices = @transform_4, window_bounds = array<i64: 64, 64>}, {pipeline_mode = #tpu.pipeline_mode<synchronous>, transform_indices = @transform_5, window_bounds = array<i64: 2, 64>}, {pipeline_mode = #tpu.pipeline_mode<synchronous>, transform_indices = @transform_6, window_bounds = array<i64: 2, 64>}, {pipeline_mode = #tpu.pipeline_mode<synchronous>, transform_indices = @transform_7, window_bounds = array<i64: 2, 1>}, {transform_indices = @transform_8, window_bounds = array<i64: 2, 8>}]} {
    %c0 = arith.constant 0 : index
    %c0_0 = arith.constant 0 : index
    %0 = vector.load %arg1[%c0, %c0_0] : memref<8x10xf32, #tpu.memory_space<vmem>>, vector<8x10xf32>
    %c0_1 = arith.constant 0 : index
    %c0_2 = arith.constant 0 : index
    %1 = vector.load %arg3[%c0_1, %c0_2] : memref<10x64xf32, #tpu.memory_space<vmem>>, vector<10x64xf32>
    %cst = arith.constant dense<0.000000e+00> : vector<8x64xf32>
    %2 = tpu.matmul %0, %1, %cst {dimension_numbers = #tpu.dot_dimension_numbers<[1], [0], [0], [1], [0, 0, 1, 1], [], []>, precision = #tpu.contract_precision<fp32>} : vector<8x10xf32>, vector<10x64xf32>, vector<8x64xf32> -> vector<8x64xf32>
    %c0_3 = arith.constant 0 : index
    %c0_4 = arith.constant 0 : index
    %3 = vector.load %arg2[%c0_3, %c0_4] : memref<8x4xf32, #tpu.memory_space<vmem>>, vector<8x4xf32>
    %c0_5 = arith.constant 0 : index
    %c0_6 = arith.constant 0 : index
    %4 = vector.load %arg4[%c0_5, %c0_6] : memref<4x64xf32, #tpu.memory_space<vmem>>, vector<4x64xf32>
    %cst_7 = arith.constant dense<0.000000e+00> : vector<8x64xf32>
    %5 = tpu.matmul %3, %4, %cst_7 {dimension_numbers = #tpu.dot_dimension_numbers<[1], [0], [0], [1], [0, 0, 1, 1], [], []>, precision = #tpu.contract_precision<fp32>} : vector<8x4xf32>, vector<4x64xf32>, vector<8x64xf32> -> vector<8x64xf32>
    %6 = arith.addf %2, %5 : vector<8x64xf32>
    %c0_8 = arith.constant 0 : index
    %c0_9 = arith.constant 0 : index
    %7 = vector.load %arg7[%c0_8, %c0_9] : memref<2x64xf32, #tpu.memory_space<vmem>>, vector<1x64xf32>
    %8 = vector.broadcast %7 : vector<1x64xf32> to vector<8x64xf32>
    %9 = arith.addf %6, %8 : vector<8x64xf32>
    %cst_10 = arith.constant 0.000000e+00 : f32
    %10 = vector.broadcast %cst_10 : f32 to vector<8x64xf32>
    %11 = arith.maximumf %9, %10 : vector<8x64xf32>
    %c0_11 = arith.constant 0 : index
    %c0_12 = arith.constant 0 : index
    %12 = vector.load %arg5[%c0_11, %c0_12] : memref<64x64xf32, #tpu.memory_space<vmem>>, vector<64x64xf32>
    %cst_13 = arith.constant dense<0.000000e+00> : vector<8x64xf32>
    %13 = tpu.matmul %11, %12, %cst_13 {dimension_numbers = #tpu.dot_dimension_numbers<[1], [0], [0], [1], [0, 0, 1, 1], [], []>, precision = #tpu.contract_precision<fp32>} : vector<8x64xf32>, vector<64x64xf32>, vector<8x64xf32> -> vector<8x64xf32>
    %c1 = arith.constant 1 : index
    %c0_14 = arith.constant 0 : index
    %14 = vector.load %arg7[%c1, %c0_14] : memref<2x64xf32, #tpu.memory_space<vmem>>, vector<1x64xf32>
    %15 = vector.broadcast %14 : vector<1x64xf32> to vector<8x64xf32>
    %16 = arith.addf %13, %15 : vector<8x64xf32>
    %cst_15 = arith.constant 0.000000e+00 : f32
    %17 = vector.broadcast %cst_15 : f32 to vector<8x64xf32>
    %18 = arith.maximumf %16, %17 : vector<8x64xf32>
    %c0_16 = arith.constant 0 : index
    %c0_17 = arith.constant 0 : index
    %19 = vector.load %arg6[%c0_16, %c0_17] : memref<2x64xf32, #tpu.memory_space<vmem>>, vector<2x64xf32>
    %cst_18 = arith.constant dense<0.000000e+00> : vector<2x8xf32>
    %20 = tpu.matmul %19, %18, %cst_18 {dimension_numbers = #tpu.dot_dimension_numbers<[1], [1], [0], [0], [0, 0, 1, 0], [], []>, precision = #tpu.contract_precision<fp32>} : vector<2x64xf32>, vector<8x64xf32>, vector<2x8xf32> -> vector<2x8xf32>
    %c0_19 = arith.constant 0 : index
    %c0_20 = arith.constant 0 : index
    %21 = vector.load %arg8[%c0_19, %c0_20] : memref<2x1xf32, #tpu.memory_space<vmem>>, vector<2x1xf32>
    %22 = vector.broadcast %21 : vector<2x1xf32> to vector<2x8xf32>
    %23 = arith.addf %20, %22 : vector<2x8xf32>
    %c0_21 = arith.constant 0 : index
    %c0_22 = arith.constant 0 : index
    %24 = vector.load %arg9[%c0_21, %c0_22] : memref<2x8xf32, #tpu.memory_space<vmem>>, vector<2x8xf32>
    tpu.vector_store %arg9[%c0_21, %c0_22], %23 {strides = array<i32>} : memref<2x8xf32, #tpu.memory_space<vmem>>, vector<2x8xf32>,
    return
  }
  func.func @transform_0(%arg0: i32) -> (i32, i32) {
    %c0_i32 = arith.constant 0 : i32
    %c0_i32_0 = arith.constant 0 : i32
    return %arg0, %c0_i32 : i32, i32
  }
  func.func @transform_1(%arg0: i32) -> (i32, i32) {
    %c0_i32 = arith.constant 0 : i32
    %c0_i32_0 = arith.constant 0 : i32
    return %arg0, %c0_i32 : i32, i32
  }
  func.func @transform_2(%arg0: i32) -> (i32, i32) {
    %c0_i32 = arith.constant 0 : i32
    %c0_i32_0 = arith.constant 0 : i32
    %c0_i32_1 = arith.constant 0 : i32
    return %c0_i32, %c0_i32_0 : i32, i32
  }
  func.func @transform_3(%arg0: i32) -> (i32, i32) {
    %c0_i32 = arith.constant 0 : i32
    %c0_i32_0 = arith.constant 0 : i32
    %c0_i32_1 = arith.constant 0 : i32
    return %c0_i32, %c0_i32_0 : i32, i32
  }
  func.func @transform_4(%arg0: i32) -> (i32, i32) {
    %c0_i32 = arith.constant 0 : i32
    %c0_i32_0 = arith.constant 0 : i32
    %c0_i32_1 = arith.constant 0 : i32
    return %c0_i32, %c0_i32_0 : i32, i32
  }
  func.func @transform_5(%arg0: i32) -> (i32, i32) {
    %c0_i32 = arith.constant 0 : i32
    %c0_i32_0 = arith.constant 0 : i32
    %c0_i32_1 = arith.constant 0 : i32
    return %c0_i32, %c0_i32_0 : i32, i32
  }
  func.func @transform_6(%arg0: i32) -> (i32, i32) {
    %c0_i32 = arith.constant 0 : i32
    %c0_i32_0 = arith.constant 0 : i32
    %c0_i32_1 = arith.constant 0 : i32
    return %c0_i32, %c0_i32_0 : i32, i32
  }
  func.func @transform_7(%arg0: i32) -> (i32, i32) {
    %c0_i32 = arith.constant 0 : i32
    %c0_i32_0 = arith.constant 0 : i32
    %c0_i32_1 = arith.constant 0 : i32
    return %c0_i32, %c0_i32_0 : i32, i32
  }
  func.func @transform_8(%arg0: i32) -> (i32, i32) {
    %c0_i32 = arith.constant 0 : i32
    %c0_i32_0 = arith.constant 0 : i32
    return %c0_i32, %arg0 : i32, i32
  }
}

</mosaic_0001>

<bundles_post_ra>
// kernel: meta_q_forward.1
= control target key start
LH: loop header
LB: loop body
LE: loop exit
PB: predicated region body
PF: predicated region fallthrough
CT: control target
= control target key end

     0   :  { %13 = vsyncpa [#allocation3], 0  ;;  %s2756_s0 = inlined_call_operand.vmem [shape: f32[8,10], index: 0, kind: input, shape index: {}]   ;;  %s2757_s1 = inlined_call_operand.vmem [shape: f32[8,4], index: 1, kind: input, shape index: {}]   ;;  %s2758_s2 = inlined_call_operand.vmem [shape: f32[10,64], index: 2, kind: input, shape index: {}]   ;;  %s2759_s3 = inlined_call_operand.vmem [shape: f32[4,64], index: 3, kind: input, shape index: {}]   ;;  %s2760_s4 = inlined_call_operand.hbm [shape: f32[64,64], index: 4, kind: input, shape index: {}]   ;;  %s2761_s5 = inlined_call_operand.vmem [shape: f32[2,64], index: 5, kind: input, shape index: {}]   ;;  %s2762_s6 = inlined_call_operand.hbm [shape: f32[2,64], index: 6, kind: input, shape index: {}]   ;;  %s2763_s7 = inlined_call_operand.vmem [shape: f32[2,1], index: 7, kind: input, shape index: {}]   ;;  %s2764_s8 = inlined_call_operand.vmem [shape: f32[2,8], index: 8, kind: output, shape index: {}]  }
   0x1   :  { %14 = vsyncpa [#allocation5], 0  ;;  %s2492_s27 = smov [#allocation2]   ;;  %s2444_s9 = scalar_lea.hbm %s2760_s4, 1024 }
   0x2   :  { %s28_s28 = sshll.u32 %s2492_s27, 4  ;;  %p2445_p0 = scmp.ne.s32.totalorder %s2760_s4, %s2444_s9  ;;  %s29_s28 = int_to_ptr.vmem [resolvable:$true] %s28_s28 }
   0x3   :  { %p2448_p1 = scmp.lt.u32.totalorder %s2444_s9, %s2760_s4 }
   0x5   :  { %p2450_p2 = pnand %p2448_p1, %p2445_p0 }
   0x7   :  { %2453 = shalt.err (!%p2450_p2)
}
   0x8   :  { %s2454_s14 = scalar_lea.vmem %s29_s28, 1024  ;;  %p2459_p4 = scmp.lt.s32.totalorder %s29_s28, %s29_s28 }
   0x9   :  { %p2455_p3 = scmp.ne.s32.totalorder %s29_s28, %s2454_s14  ;;  %p2460_p5 = scmp.lt.s32.totalorder %s2454_s14, %s2454_s14 }
   0xb   :  { %p2461_p6 = por %p2460_p5, %p2459_p4 }
   0xd   :  { %p2462_p7 = pnand %p2461_p6, %p2455_p3 }
   0xf   :  { %2465 = shalt.err (!%p2462_p7)
}
  0x10   :  { %s2493_s15 = smov 128   ;;  %s2494_s16 = smov 8  }
  0x11   :  { %34 = dma.hbm_to_vmem [thread:$0]  %s2760_s4, 1024, %s29_s28, [#allocation3], %s2493_s15, %s2493_s15, %s2494_s16  }
  0x12   :  { %s2495_s19 = smov [#allocation4]   ;;  %s2466_s23 = scalar_lea.hbm %s2762_s6, 32 }
  0x13   :  { %s43_s20 = sshll.u32 %s2495_s19, 4  ;;  %p2467_p8 = scmp.ne.s32.totalorder %s2762_s6, %s2466_s23  ;;  %s44_s20 = int_to_ptr.vmem [resolvable:$true] %s43_s20 }
  0x14   :  { %p2470_p9 = scmp.lt.u32.totalorder %s2466_s23, %s2762_s6 }
  0x16   :  { %p2472_p10 = pnand %p2470_p9, %p2467_p8 }
  0x18   :  { %2475 = shalt.err (!%p2472_p10)
}
  0x19   :  { %s2476_s29 = scalar_lea.vmem %s44_s20, 32  ;;  %p2481_p12 = scmp.lt.s32.totalorder %s44_s20, %s44_s20 }
  0x1a   :  { %p2477_p11 = scmp.ne.s32.totalorder %s44_s20, %s2476_s29  ;;  %p2482_p13 = scmp.lt.s32.totalorder %s2476_s29, %s2476_s29 }
  0x1c   :  { %p2483_p0 = por %p2482_p13, %p2481_p12 }
  0x1e   :  { %p2484_p1 = pnand %p2483_p0, %p2477_p11 }
  0x20   :  { %2487 = shalt.err (!%p2484_p1)
}
  0x21   :  { %46 = dma.hbm_to_vmem [thread:$0]  %s2762_s6, 32, %s44_s20, [#allocation5]  }
  0x22   :  { %2488 = dma.done.wait [#allocation3], 1024  }
  0x23   :  { %2489 = vsyncadd [#allocation3], 4294966272 }
  0x24   :  { %2490 = dma.done.wait [#allocation5], 32  }
  0x25   :  { %2491 = vsyncadd [#allocation5], 4294967264  ;;  %v2496_v0 = vmov 0.0   ;;  %vm2497_vm0 = vmmov 0   ;;  %vm64_vm1 = vcmask 1043456   ;;  %vm60_vm2 = vcmask 31744  }
  0x26   :  { %2108 = vmatprep.subr.mxu1 %v2496_v0  ;;  %2110 = vmatprep.mubr.msk.f32.mxu1 %vm2497_vm0, %v2496_v0  ;;  %vm518_vm3 = vcmask 1041408   ;;  %vm514_vm4 = vcmask 80896   ;;  %v59_v1 = vld [vmem:[%s2759_s3] sm:$0xf]  ;;  %v57_v6 = vld [vmem:[%s2758_s2 + $0x8] sm:$0x3] }
  0x27   :  { %2118 = vmatprep.subr.mxu0 %v2496_v0  ;;  %2120 = vmatprep.mubr.msk.f32.mxu0 %vm2497_vm0, %v2496_v0  ;;  %v58_v2 = vld [vmem:[%s2757_s1] sm:$0xff]  ;;  %v66_v4 = vsel %vm64_vm1, %v59_v1, 0  ;;  %v520_v11 = vsel %vm518_vm3, %v57_v6, 0  ;;  %v2498_v26 = vmov 0.0|0.0   ;;  %v989_v41 = vld [vmem:[#allocation2 + $0x8] sm:$0xff]  ;;  %v990_v46 = vld [vmem:[#allocation2 + $0x10] sm:$0xff] }
  0x28   :  { %v56_v3 = vld [vmem:[%s2758_s2] sm:$0xff]  ;;  %v62_v5 = vsel %vm60_vm2, %v58_v2, 0  ;;  %v69_v9 = vand.u32 4294901760, %v66_v4  ;;  %v526_v13 = vand.u32 4294901760, %v520_v11  ;;  %v1009_v43 = vand.u32 4294901760, %v989_v41  ;;  %v991_v47 = vld [vmem:[#allocation2 + $0x18] sm:$0xff] }
  0x29   :  { %v523_v7 = vand.u32 4294901760, %v56_v3  ;;  %v55_v8 = vld [vmem:[%s2756_s0] sm:$0xff]  ;;  %v134_v10 = vand.u32 4294901760, %v62_v5  ;;  %v1012_v49 = vand.u32 4294901760, %v990_v46  ;;  %v1015_v50 = vand.u32 4294901760, %v991_v47  ;;  %v993_v54 = vld [vmem:[#allocation2 + $0x28] sm:$0xff] }
  0x2a   :  { %v516_v12 = vsel %vm514_vm4, %v55_v8, 0  ;;  %2109 = vmatpush3.msra.mxu1 %v69_v9  ;;  %v146_v15 = vsub.f32 %v66_v4, %v69_v9  ;;  %v608_v18 = vsub.f32 %v520_v11, %v526_v13  ;;  %v988_v40 = vld [vmem:[#allocation2] sm:$0xff]  ;;  %v2634_v45 = vsub.f32 %v989_v41, %v1009_v43  ;;  %v994_v61 = vld [vmem:[#allocation2 + $0x30] sm:$0xff]  ;;  %v995_v62 = vld [vmem:[#allocation2 + $0x38] sm:$0xff] }
  0x2b   :  { %v2590_v14 = vand.u32 4294901760, %v516_v12  ;;  %v135_v16 = vsub.f32 %v62_v5, %v134_v10  ;;  %2113 = vmatprep.subr.mxu1 %v2496_v0  ;;  %v601_v17 = vsub.f32 %v56_v3, %v523_v7  ;;  %v2325_v25 = vpack.c.bf16 %v526_v13, %v523_v7  ;;  %v992_v53 = vld [vmem:[#allocation2 + $0x20] sm:$0xff] }
  0x2c   :  { %v147_v21 = vand.u32 4294901760, %v146_v15  ;;  %2119 = vmatpush3.msra.mxu0 %v146_v15  ;;  %v609_v29 = vand.u32 4294901760, %v608_v18  ;;  %v1006_v42 = vand.u32 4294901760, %v988_v40  ;;  %v2638_v51 = vsub.f32 %v990_v46, %v1012_v49 }
  0x2d   :  { %v590_v19 = vsub.f32 %v516_v12, %v2590_v14  ;;  %v136_v20 = vand.u32 4294901760, %v135_v16  ;;  %2121 = vmatmul.mubr.f32.vlgmr.msra.gmra.mrb[0].mxu0 %v135_v16  ;;  %2128 = vmatprep.subr.mxu0 %v2496_v0  ;;  %v602_v28 = vand.u32 4294901760, %v601_v17  ;;  %v2331_v33 = vpack.c.bf16 %v608_v18, %v601_v17 }
  0x2e   :  { %v148_v24 = vsub.f32 %v146_v15, %v147_v21  ;;  %2129 = vmatpush3.msra.mxu0 %v147_v21  ;;  %2130 = vmatprep.mubr.msk.f32.mxu0 %vm2497_vm0, %v2496_v0  ;;  %v610_v35 = vsub.f32 %v608_v18, %v609_v29  ;;  %v2632_v44 = vsub.f32 %v988_v40, %v1006_v42  ;;  %v1018_v56 = vand.u32 4294901760, %v992_v53 }
  0x2f   :  { %v591_v22 = vand.u32 4294901760, %v590_v19  ;;  %v137_v23 = vsub.f32 %v135_v16, %v136_v20  ;;  %2324 = vmatprep.subr.bf16.mxu0 %v2498_v26  ;;  %v603_v34 = vsub.f32 %v601_v17, %v602_v28  ;;  %v2337_v36 = vpack.c.bf16 %v609_v29, %v602_v28 }
  0x30   :  { %v149_v31 = vand.u32 4294901760, %v148_v24  ;;  %v611_v38 = vand.u32 4294901760, %v610_v35  ;;  %v2367_v48 = vpack.c.bf16 %v2634_v45, %v2632_v44  ;;  %v2640_v52 = vsub.f32 %v991_v47, %v1015_v50 }
  0x31   :  { %v592_v27 = vsub.f32 %v590_v19, %v591_v22  ;;  %v138_v30 = vand.u32 4294901760, %v137_v23  ;;  %2131 = vmatmul.mubr.f32.vlgmr.msra.gmra.mrb[2].mxu0 %v134_v10  ;;  %v604_v37 = vand.u32 4294901760, %v603_v34  ;;  %v1021_v57 = vand.u32 4294901760, %v993_v54 }
  0x32   :  { %2326 = vmatpush3.bf16.msra.mxu0 %v2325_v25  ;;  %2142 = vmatprep.mubr.msk.f32.mxu0 %vm2497_vm0, %v2496_v0  ;;  %v2370_v55 = vpack.c.bf16 %v2640_v52, %v2638_v51  ;;  %v2645_v58 = vpack.c.bf16 %v1009_v43, %v1006_v42  ;;  %v1118_v59 = vsub.f32 %v992_v53, %v1018_v56  ;;  %v1024_v1 = vand.u32 4294901760, %v994_v61 }
  0x33   :  { %v593_v32 = vand.u32 4294901760, %v592_v27  ;;  %2111 = vmatmul.mubr.f32.vlgmr.msra.gmra.mrb[0].mxu1 %v138_v30  ;;  %2330 = vmatprep.subr.bf16.mxu0 %v2498_v26  ;;  %v2328_v39 = vpack.c.bf16 %v611_v38, %v604_v37  ;;  %v1125_v60 = vsub.f32 %v993_v54, %v1021_v57  ;;  %v1027_v2 = vand.u32 4294901760, %v995_v62 }
  0x34   :  { %2114 = vmatpush3.msra.mxu1 %v149_v31  ;;  %2115 = vmatprep.mubr.msk.f32.mxu1 %vm2497_vm0, %v2496_v0  ;;  %v2650_v3 = vpack.c.bf16 %v1015_v50, %v1012_v49  ;;  %v1132_v4 = vsub.f32 %v994_v61, %v1024_v1  ;;  %v2655_v7 = vpack.c.bf16 %v1021_v57, %v1018_v56  ;;  %v1091_v8 = vand.u32 4294901760, %v2632_v44 }
  0x35   :  { %2123 = vmatprep.subr.mxu1 %v2496_v0  ;;  %2143 = vmatmul.mubr.f32.vlgmr.msra.gmra.mrb[4].mxu0 %v593_v32  ;;  %v2373_v63 = vpack.c.bf16 %v1125_v60, %v1118_v59  ;;  %v1139_v5 = vsub.f32 %v995_v62, %v1027_v2  ;;  %v1105_v15 = vand.u32 4294901760, %v2638_v51  ;;  %v1112_v16 = vand.u32 4294901760, %v2640_v52 }
  0x36   :  { %2332 = vmatpush3.bf16.msra.mxu0 %v2331_v33  ;;  %2156 = vmatprep.mubr.msk.f32.mxu0 %vm2497_vm0, %v2496_v0  ;;  %v1092_v11 = vsub.f32 %v2632_v44, %v1091_v8  ;;  %v1126_v23 = vand.u32 4294901760, %v1125_v60  ;;  %v1133_v30 = vand.u32 4294901760, %v1132_v4  ;;  %vm1001_vm5 = vcmask 523264  }
  0x37   :  { %2116 = vmatmul.mubr.f32.vlgmr.msra.gmra.mrb[2].mxu1 %v134_v10  ;;  %2336 = vmatprep.subr.bf16.mxu0 %v2498_v26  ;;  %v2376_v6 = vpack.c.bf16 %v1139_v5, %v1132_v4  ;;  %v1106_v18 = vsub.f32 %v2638_v51, %v1105_v15  ;;  %v1140_v31 = vand.u32 4294901760, %v1139_v5  ;;  %vm2002_vm6 = vcmask 58368  }
  0x38   :  { %2124 = vmatpush3.msra.mxu1 %v69_v9  ;;  %2125 = vmatprep.mubr.msk.f32.mxu1 %vm2497_vm0, %v2496_v0  ;;  %v1093_v13 = vand.u32 4294901760, %v1092_v11  ;;  %v1127_v27 = vsub.f32 %v1125_v60, %v1126_v23  ;;  %v1134_v33 = vsub.f32 %v1132_v4, %v1133_v30 }
  0x39   :  { %2133 = vmatprep.subr.mxu1 %v2496_v0  ;;  %2157 = vmatmul.mubr.f32.vlgmr.msra.gmra.mrb[6].mxu0 %v590_v19  ;;  %v1113_v19 = vsub.f32 %v2640_v52, %v1112_v16  ;;  %v1141_v34 = vsub.f32 %v1139_v5, %v1140_v31  ;;  %v2686_v41 = vpack.c.bf16 %v1140_v31, %v1133_v30 }
  0x3a   :  { %2338 = vmatpush3.bf16.msra.mxu0 %v2337_v36  ;;  %2170 = vmatprep.mubr.msk.f32.mxu0 %vm2497_vm0, %v2496_v0  ;;  %v1128_v29 = vand.u32 4294901760, %v1127_v27  ;;  %v1135_v36 = vand.u32 4294901760, %v1134_v33 }
  0x3b   :  { %2126 = vmatmul.mubr.f32.vlgmr.msra.gmra.mrb[4].mxu1 %v136_v20  ;;  %2366 = vmatprep.subr.bf16.mxu0 %v2498_v26  ;;  %v1107_v20 = vand.u32 4294901760, %v1106_v18  ;;  %v1114_v21 = vand.u32 4294901760, %v1113_v19  ;;  %v1142_v37 = vand.u32 4294901760, %v1141_v34 }
  0x3c   :  { %2134 = vmatpush3.msra.mxu1 %v69_v9  ;;  %2135 = vmatprep.mubr.msk.f32.mxu1 %vm2497_vm0, %v2496_v0  ;;  %v1098_v9 = vand.u32 4294901760, %v2634_v45 }
  0x3d   :  { %2327 = vmatprep.subr.bf16.mxu1 %v2498_v26  ;;  %2171 = vmatmul.mubr.f32.vlgmr.msra.gmra.mrb[8].mxu0 %v2590_v14  ;;  %v2674_v24 = vpack.c.bf16 %v1114_v21, %v1107_v20  ;;  %v2680_v38 = vpack.c.bf16 %v1142_v37, %v1135_v36 }
  0x3e   :  { %2234 = vmatprep.mubr.msk.f32.mxu0 %vm2497_vm0, %v2496_v0  ;;  %2368 = vmatpush3.bf16.msra.mxu0 %v2367_v48  ;;  %v1099_v12 = vsub.f32 %v2634_v45, %v1098_v9  ;;  %v2678_v35 = vpack.c.bf16 %v1098_v9, %v1091_v8 }
  0x3f   :  { %2136 = vmatmul.mubr.f32.vlgmr.msra.gmra.mrb[6].mxu1 %v134_v10  ;;  %2369 = vmatprep.subr.bf16.mxu0 %v2498_v26  ;;  %v2662_v10 = vpack.c.bf16 %v1027_v2, %v1024_v1 }
  0x40   :  { %2329 = vmatpush3.bf16.msra.mxu1 %v2328_v39  ;;  %2149 = vmatprep.mubr.msk.f32.mxu1 %vm2497_vm0, %v2496_v0  ;;  %v2682_v39 = vpack.c.bf16 %v1112_v16, %v1105_v15  ;;  %v2010_v16 = vld [vmem:[#allocation4] ss:$0 sm:$0xff] }
  0x41   :  { %2333 = vmatprep.subr.bf16.mxu1 %v2498_v26 }
  0x42   :  { %2371 = vmatpush3.bf16.msra.mxu0 %v2370_v55 }
  0x43   :  { %2150 = vmatmul.mubr.f32.vlgmr.msra.gmra.mrb[8].mxu1 %v2590_v14  ;;  %2372 = vmatprep.subr.bf16.mxu0 %v2498_v26 }
  0x44   :  { %2335 = vmatpush3.bf16.msra.mxu1 %v2325_v25  ;;  %2163 = vmatprep.mubr.msk.f32.mxu1 %vm2497_vm0, %v2496_v0 }
  0x45   :  { %2339 = vmatprep.subr.bf16.mxu1 %v2498_v26 }
  0x46   :  { %2374 = vmatpush3.bf16.msra.mxu0 %v2373_v63 }
  0x47   :  { %2164 = vmatmul.mubr.f32.vlgmr.msra.gmra.mrb[10].mxu1 %v591_v22  ;;  %2375 = vmatprep.subr.bf16.mxu0 %v2498_v26  ;;  %v1119_v22 = vand.u32 4294901760, %v1118_v59 }
  0x48   :  { %2341 = vmatpush3.bf16.msra.mxu1 %v2325_v25  ;;  %2177 = vmatprep.mubr.msk.f32.mxu1 %vm2497_vm0, %v2496_v0 }
  0x49   :  { %2342 = vmatprep.subr.bf16.mxu1 %v2498_v26  ;;  %v1120_v25 = vsub.f32 %v1118_v59, %v1119_v22  ;;  %v2684_v40 = vpack.c.bf16 %v1126_v23, %v1119_v22 }
  0x4a   :  { %2377 = vmatpush3.bf16.msra.mxu0 %v2376_v6 }
  0x4b   :  { %2178 = vmatmul.mubr.f32.vlgmr.msra.gmra.mrb[12].mxu1 %v2590_v14  ;;  %2378 = vmatprep.subr.bf16.mxu0 %v2498_v26  ;;  %v1100_v14 = vand.u32 4294901760, %v1099_v12  ;;  %v1121_v28 = vand.u32 4294901760, %v1120_v25 }
  0x4c   :  { %2196 = vmatprep.mubr.msk.f32.mxu1 %vm2497_vm0, %v2496_v0  ;;  %2344 = vmatpush3.bf16.msra.mxu1 %v2645_v58 }
  0x4d   :  { %2345 = vmatprep.subr.bf16.mxu1 %v2498_v26  ;;  %v2670_v17 = vpack.c.bf16 %v1100_v14, %v1093_v13  ;;  %v2676_v32 = vpack.c.bf16 %v1128_v29, %v1121_v28 }
  0x50   :  { %2347 = vmatpush3.bf16.msra.mxu1 %v2650_v3 }
  0x51   :  { %2348 = vmatprep.subr.bf16.mxu1 %v2498_v26 }
  0x54   :  { %2350 = vmatpush3.bf16.msra.mxu1 %v2655_v7 }
  0x55   :  { %2351 = vmatprep.subr.bf16.mxu1 %v2498_v26 }
  0x58   :  { %2353 = vmatpush3.bf16.msra.mxu1 %v2662_v10 }
  0x59   :  { %2354 = vmatprep.subr.bf16.mxu1 %v2498_v26 }
 0x100   :  { %v290_v42 = vpop.f32.mrb[0].mxu0 }
 0x101   :  { %v2122_v43 = vpop.f32.mrb[1].mxu0 }
 0x104   :  { %v438_v44 = vpop.f32.mrb[2].mxu0 }
 0x105   :  { %v2132_v46 = vpop.f32.mrb[3].mxu0 }
 0x106   :  { %v140_v45 = vpop.f32.mrb[0].mxu1 }
 0x107   :  { %v2112_v47 = vpop.f32.mrb[1].mxu1 }
 0x108   :  { %v595_v48 = vpop.f32.mrb[4].mxu0 }
 0x109   :  { %v2144_v50 = vpop.f32.mrb[5].mxu0 }
 0x10a   :  { %v216_v49 = vpop.f32.mrb[2].mxu1 }
 0x10b   :  { %v217_v51 = vadd.f32 %v216_v49, %v140_v45  ;;  %v2117_v52 = vpop.f32.mrb[3].mxu1 }
 0x10c   :  { %v752_v54 = vpop.f32.mrb[6].mxu0 }
 0x10d   :  { %v291_v53 = vadd.f32 %v290_v42, %v217_v51  ;;  %v2158_v56 = vpop.f32.mrb[7].mxu0 }
 0x10e   :  { %v364_v55 = vpop.f32.mrb[4].mxu1 }
 0x10f   :  { %v365_v57 = vadd.f32 %v364_v55, %v291_v53  ;;  %v2127_v59 = vpop.f32.mrb[5].mxu1 }
 0x110   :  { %v904_v61 = vpop.f32.mrb[8].mxu0 }
 0x111   :  { %v439_v60 = vadd.f32 %v438_v44, %v365_v57  ;;  %v2172_v63 = vpop.f32.mrb[9].mxu0 }
 0x112   :  { %v510_v62 = vpop.f32.mrb[6].mxu1 }
 0x113   :  { %v511_v1 = vadd.f32 %v510_v62, %v439_v60  ;;  %v2137_v2 = vpop.f32.mrb[7].mxu1 }
 0x115   :  { %v596_v4 = vadd.f32 %v595_v48, %v511_v1 }
 0x116   :  { %v676_v5 = vpop.f32.mrb[8].mxu1 }
 0x117   :  { %v677_v6 = vadd.f32 %v676_v5, %v596_v4  ;;  %v2151_v8 = vpop.f32.mrb[9].mxu1 }
 0x119   :  { %v753_v9 = vadd.f32 %v752_v54, %v677_v6 }
 0x11a   :  { %v827_v11 = vpop.f32.mrb[10].mxu1 }
 0x11b   :  { %v828_v12 = vadd.f32 %v827_v11, %v753_v9  ;;  %v2165_v13 = vpop.f32.mrb[11].mxu1 }
 0x11d   :  { %v905_v14 = vadd.f32 %v904_v61, %v828_v12 }
 0x11e   :  { %v977_v15 = vpop.f32.mrb[12].mxu1 }
 0x11f   :  { %v978_v18 = vadd.f32 %v977_v15, %v905_v14  ;;  %v2179_v19 = vpop.f32.mrb[13].mxu1 }
 0x121   :  { %v986_v20 = vadd.f32 %v2010_v16, %v978_v18 }
 0x123   :  { %v987_v21 = vmax.f32 %v986_v20, 0.0 }
 0x125   :  { %v1003_v22 = vsel %vm1001_vm5, %v987_v21, 0 }
 0x126   :  { %v1078_v23 = vand.u32 4294901760, %v1003_v22 }
 0x128   :  { %v1079_v25 = vsub.f32 %v1003_v22, %v1078_v23 }
 0x12a   :  { %2235 = vmatmul.mubr.f32.vlgmr.msra.gmra.mrb[10].mxu0 %v1079_v25  ;;  %v1080_v27 = vand.u32 4294901760, %v1079_v25 }
 0x12b   :  { %2380 = vmatpush3.bf16.msra.mxu0 %v2645_v58  ;;  %2253 = vmatprep.mubr.msk.f32.mxu0 %vm2497_vm0, %v2496_v0 }
 0x12c   :  { %2381 = vmatprep.subr.bf16.mxu0 %v2498_v26  ;;  %v1081_v28 = vsub.f32 %v1079_v25, %v1080_v27 }
 0x12e   :  { %v1082_v29 = vand.u32 4294901760, %v1081_v28 }
 0x12f   :  { %2383 = vmatpush3.bf16.msra.mxu0 %v2650_v3 }
 0x130   :  { %2197 = vmatmul.mubr.f32.vlgmr.msra.gmra.mrb[14].mxu1 %v1082_v29  ;;  %2384 = vmatprep.subr.bf16.mxu0 %v2498_v26 }
 0x131   :  { %2356 = vmatpush3.bf16.msra.mxu1 %v2670_v17  ;;  %2215 = vmatprep.mubr.msk.f32.mxu1 %vm2497_vm0, %v2496_v0  ;;  %v2499_v17 = vmov 0  }
 0x132   :  { %2357 = vmatprep.subr.bf16.mxu1 %v2498_v26  ;;  %2443 = vset.pattern.permute.xlu0 %v2499_v17 }
 0x133   :  { %2386 = vmatpush3.bf16.msra.mxu0 %v2655_v7 }
 0x134   :  { %2387 = vmatprep.subr.bf16.mxu0 %v2498_v26 }
 0x135   :  { %2359 = vmatpush3.bf16.msra.mxu1 %v2674_v24 }
 0x136   :  { %2360 = vmatprep.subr.bf16.mxu1 %v2498_v26 }
 0x137   :  { %2389 = vmatpush3.bf16.msra.mxu0 %v2662_v10 }
 0x138   :  { %2390 = vmatprep.subr.bf16.mxu0 %v2498_v26 }
 0x139   :  { %2362 = vmatpush3.bf16.msra.mxu1 %v2676_v32  ;;  %v2011_v32 = vld [vmem:[#allocation4 + $0x1] ss:$0 sm:$0xff] }
 0x13a   :  { %2254 = vmatmul.mubr.f32.vlgmr.msra.gmra.mrb[10].mxu0 %v1080_v27  ;;  %2363 = vmatprep.subr.bf16.mxu1 %v2498_v26 }
 0x13b   :  { %2392 = vmatpush3.bf16.msra.mxu0 %v2678_v35  ;;  %2272 = vmatprep.mubr.msk.f32.mxu0 %vm2497_vm0, %v2496_v0 }
 0x13c   :  { %2393 = vmatprep.subr.bf16.mxu0 %v2498_v26 }
 0x13d   :  { %2365 = vmatpush3.bf16.msra.mxu1 %v2680_v38 }
 0x13e   :  { %2294 = vmatprep.subr.mxu1 %v2496_v0 }
 0x13f   :  { %2395 = vmatpush3.bf16.msra.mxu0 %v2682_v39 }
 0x140   :  { %2216 = vmatmul.mubr.f32.vlgmr.msra.gmra.mrb[14].mxu1 %v1078_v23  ;;  %2396 = vmatprep.subr.bf16.mxu0 %v2498_v26 }
 0x141   :  { %2296 = vmatprep.mubr.msk.f32.mxu1 %vm2497_vm0, %v2496_v0 }
 0x143   :  { %2398 = vmatpush3.bf16.msra.mxu0 %v2684_v40 }
 0x144   :  { %2399 = vmatprep.subr.bf16.mxu0 %v2498_v26 }
 0x147   :  { %2401 = vmatpush3.bf16.msra.mxu0 %v2686_v41 }
 0x148   :  { %2402 = vmatprep.subr.bf16.mxu0 %v2498_v26 }
 0x14a   :  { %2273 = vmatmul.mubr.f32.vlgmr.msra.gmra.mrb[10].mxu0 %v1078_v23 }
 0x14b   :  { %2404 = vmatpush3.bf16.msra.mxu0 %v2645_v58  ;;  %2291 = vmatprep.mubr.msk.f32.mxu0 %vm2497_vm0, %v2496_v0  ;;  %v1544_v58 = vld [vmem:[%s2763_s7] sm:$0x3] }
 0x14c   :  { %2405 = vmatprep.subr.bf16.mxu0 %v2498_v26  ;;  %1547 = vperm.xlu0 %2443, %v1544_v58  }
 0x14f   :  { %2407 = vmatpush3.bf16.msra.mxu0 %v2650_v3  ;;  %v1543_v3 = vld [vmem:[%s2761_s5] sm:$0x3] }
 0x150   :  { %2408 = vmatprep.subr.bf16.mxu0 %v2498_v26 }
 0x153   :  { %2410 = vmatpush3.bf16.msra.mxu0 %v2655_v7  ;;  %v1551_v7 = vsel %vm1001_vm5, %v1543_v3, 0 }
 0x154   :  { %2411 = vmatprep.subr.bf16.mxu0 %v2498_v26  ;;  %v1622_v31 = vand.u32 4294901760, %v1551_v7 }
 0x156   :  { %v1623_v26 = vsub.f32 %v1551_v7, %v1622_v31 }
 0x157   :  { %2413 = vmatpush3.bf16.msra.mxu0 %v2662_v10 }
 0x158   :  { %v1624_v33 = vand.u32 4294901760, %v1623_v26 }
 0x15a   :  { %2292 = vmatmul.mubr.f32.vlgmr.msra.gmra.mrb[10].mxu0 %v1078_v23  ;;  %v1625_v38 = vsub.f32 %v1623_v26, %v1624_v33 }
 0x15c   :  { %v1626_v41 = vand.u32 4294901760, %v1625_v38 }
 0x1cb   :  { %v1548_v46 = vpop.permute.xlu0 %1547 }
 0x213   :  { %v1195_v24 = vpop.f32.mrb[14].mxu1 }
 0x214   :  { %v2217_v30 = vpop.f32.mrb[15].mxu1  ;;  %v2414_v10 = vadd.f32 %v2011_v32, %v1195_v24 }
 0x22d   :  { %v1538_v34 = vpop.f32.mrb[10].mxu0 }
 0x22e   :  { %v2415_v35 = vadd.f32 %v2414_v10, %v1538_v34  ;;  %v2293_v36 = vpop.f32.mrb[11].mxu0 }
 0x230   :  { %v1542_v37 = vmax.f32 %v2415_v35, 0.0 }
 0x232   :  { %v1554_v39 = vsel %vm1001_vm5, %v1542_v37, 0 }
 0x233   :  { %v1557_v40 = vand.u32 4294901760, %v1554_v39 }
 0x235   :  { %v1634_v42 = vsub.f32 %v1554_v39, %v1557_v40  ;;  %2295 = vmatpush3.xpose.msra.mxu1 %v1557_v40 }
 0x236   :  { %2299 = vmatprep.subr.mxu1 %v2496_v0 }
 0x237   :  { %v1635_v43 = vand.u32 4294901760, %v1634_v42 }
 0x238   :  { %2297 = vmatmul.mubr.f32.vlgmr.msra.gmra.mrb[16].mxu1 %v1626_v41 }
 0x239   :  { %v1636_v44 = vsub.f32 %v1634_v42, %v1635_v43  ;;  %2301 = vmatprep.mubr.msk.f32.mxu1 %vm2497_vm0, %v2496_v0 }
 0x23b   :  { %v1637_v45 = vand.u32 4294901760, %v1636_v44 }
 0x23d   :  { %2300 = vmatpush3.xpose.msra.mxu1 %v1637_v45 }
 0x23e   :  { %2304 = vmatprep.subr.mxu1 %v2496_v0 }
 0x240   :  { %2302 = vmatmul.mubr.f32.vlgmr.msra.gmra.mrb[16].mxu1 %v1622_v31 }
 0x241   :  { %2305 = vmatpush3.xpose.msra.mxu1 %v1634_v42  ;;  %2306 = vmatprep.mubr.msk.f32.mxu1 %vm2497_vm0, %v2496_v0 }
 0x242   :  { %2309 = vmatprep.subr.mxu1 %v2496_v0 }
 0x248   :  { %2307 = vmatmul.mubr.f32.vlgmr.msra.gmra.mrb[16].mxu1 %v1623_v26 }
 0x249   :  { %2310 = vmatpush3.xpose.msra.mxu1 %v1557_v40  ;;  %2311 = vmatprep.mubr.msk.f32.mxu1 %vm2497_vm0, %v2496_v0 }
 0x24a   :  { %2314 = vmatprep.subr.mxu1 %v2496_v0 }
 0x250   :  { %2312 = vmatmul.mubr.f32.vlgmr.msra.gmra.mrb[16].mxu1 %v1624_v33 }
 0x251   :  { %2315 = vmatpush3.xpose.msra.mxu1 %v1635_v43  ;;  %2316 = vmatprep.mubr.msk.f32.mxu1 %vm2497_vm0, %v2496_v0 }
 0x252   :  { %2319 = vmatprep.subr.mxu1 %v2496_v0 }
 0x258   :  { %2317 = vmatmul.mubr.f32.vlgmr.msra.gmra.mrb[16].mxu1 %v1622_v31 }
 0x259   :  { %2320 = vmatpush3.xpose.msra.mxu1 %v1557_v40  ;;  %2321 = vmatprep.mubr.msk.f32.mxu1 %vm2497_vm0, %v2496_v0 }
 0x260   :  { %2322 = vmatmul.mubr.f32.vlgmr.msra.gmra.mrb[16].mxu1 %v1622_v31 }
 0x333   :  { %v1998_v47 = vpop.f32.mrb[16].mxu1 }
 0x334   :  { %v2416_v48 = vadd.f32 %v1998_v47, %v1548_v46  ;;  %v2323_v49 = vpop.f32.mrb[17].mxu1 }
 0x336   :  { %2003 = vst.msk [vmem:[%s2764_s8] sm:$0x3] %vm2002_vm6, %v2416_v48 }
 0x337   :  { %2008 = vsyncpa [#allocation3], 1 }
 0x338   :  { %2009 = vsyncpa [#allocation5], 1 }

</bundles_post_ra>
